<compile_context>
chip_gen: v7x
topology: tpu7x:2x2x1
jax: 0.10.0
libtpu: 0.0.40
codegen_flags: <defaults>
</compile_context>

<pallas_src>
import jax
import jax.numpy as jnp
from jax.experimental import pallas as pl
from jax.experimental.pallas import tpu as pltpu


def build_grid(resolution):
    """Return grid with shape [H, W, 4] (matches torch build_grid, batch dim dropped)."""
    ranges = [jnp.linspace(0.0, 1.0, num=res) for res in resolution]
    g = jnp.meshgrid(*ranges, indexing="ij")
    g = jnp.stack(g, axis=-1)                      # [H, W, 2]
    g = jnp.reshape(g, (resolution[0], resolution[1], -1))
    return jnp.concatenate([g, 1.0 - g], axis=-1)  # [H, W, 4]


def _soft_pos_embed_kernel(gT_ref, wT_ref, b_ref, x_ref, o_ref, emb_ref):
    # gT_ref:  [4, hw_tile]        transposed position grid (per HW tile)
    # wT_ref:  [C, 4]              transposed dense weight  (shared)
    # b_ref:   [C, 1]              dense bias               (shared)
    # x_ref:   [Bt, C, hw_tile]    batch block, NCHW flattened
    # o_ref:   [Bt, C, hw_tile]
    # emb_ref: [C, hw_tile]        persistent VMEM scratch, reused across batch

    # Compute the positional embedding once per HW tile (batch is the inner grid
    # axis, so program_id(1) == 0 is the first visit of this tile).
    # K=4 contraction -> 4 broadcast FMAs on the VPU, no MXU involvement.
    @pl.when(pl.program_id(1) == 0)
    def _():
        gT = gT_ref[...]                           # [4, hw_tile]  f32
        wT = wT_ref[...]                           # [C, 4]        f32
        emb = (b_ref[...]
               + wT[:, 0:1] * gT[0:1, :]
               + wT[:, 1:2] * gT[1:2, :]
               + wT[:, 2:3] * gT[2:3, :]
               + wT[:, 3:4] * gT[3:4, :])          # [C, hw_tile]  f32
        emb_ref[...] = emb.astype(emb_ref.dtype)

    x = x_ref[...]
    emb = emb_ref[...][None, :, :]
    if emb_ref.dtype == x_ref.dtype:
        # Same dtype (f32/f32 or bf16/bf16 on chips with bf16 VALUs): add natively.
        o_ref[...] = (x + emb).astype(o_ref.dtype)
    else:
        # e.g. bf16 input on v5e (no bf16 VPU): accumulate in f32.
        o_ref[...] = (x.astype(jnp.float32) + emb.astype(jnp.float32)).astype(o_ref.dtype)


def _round_up(x, m):
    return (x + m - 1) // m * m


def _pick_hw_tile(HW, C, itemsize, target_bytes):
    """Largest divisor of HW that is a multiple of 128 and keeps one x block
    (C * hw_tile * itemsize) near target_bytes.  Caller guarantees HW % 128 == 0."""
    assert HW % 128 == 0
    max_lanes = max(128, (target_bytes // max(C * itemsize, 1)) // 128 * 128)
    best = 128
    t = 128
    limit = min(HW, max_lanes)
    while t <= limit:
        if HW % t == 0:
            best = t
        t += 128
    return best


def _pick_batch_tile(B, per_batch_block_bytes, target_bytes, max_bt=4):
    """Largest divisor of B (capped) whose combined block stays under target_bytes."""
    best = 1
    for bt in range(1, min(B, max_bt) + 1):
        if B % bt == 0 and bt * per_batch_block_bytes <= target_bytes:
            best = bt
    return best


def _sublane(itemsize):
    return {4: 8, 2: 16, 1: 32}.get(itemsize, 8)


def _vmem_limit_bytes(Bt, C, hw_tile, x_itemsize, emb_itemsize):
    """Derive the scoped-VMEM limit from actual (double-buffered) block sizes,
    padded to tile granularity, with margin; capped for v7x's 64 MiB VMEM."""
    x_blk = Bt * _round_up(C, _sublane(x_itemsize)) * hw_tile * x_itemsize
    o_blk = x_blk
    g_blk = _round_up(4, 8) * hw_tile * 4
    w_blk = _round_up(C, 8) * 128 * 4
    b_blk = _round_up(C, 8) * 128 * 4
    emb = _round_up(C, _sublane(emb_itemsize)) * hw_tile * emb_itemsize
    usage = 2 * (x_blk + o_blk + g_blk + w_blk + b_blk) + emb
    limit = int(usage * 1.25) + (4 << 20)
    return max(16 << 20, min(56 << 20, limit))


def _emb_dtype(x_dtype):
    """bf16 scratch/add on chips with bf16 VALUs (v6e/v7x); f32 otherwise (and
    always f32 for f32 inputs)."""
    if x_dtype != jnp.bfloat16:
        return jnp.float32
    kind = jax.devices()[0].device_kind.lower()
    if "v5 lite" in kind or "v5e" in kind or "v5litepod" in kind:
        return jnp.float32     # v5e VPU has no native bf16
    return jnp.bfloat16


def soft_position_embed(inputs_nchw, weight, bias, resolution,
                        *, target_block_bytes=8 * 1024 * 1024,
                        donate_input=False):
    """inputs_nchw: [B, C, H, W]; weight: [4, C] (in, out); bias: [C].
    Returns [B, C, H, W]."""
    B, C, H, W = inputs_nchw.shape
    assert (H, W) == tuple(resolution)
    HW = H * W

    # Tiny operands, transposed so HW is the lane axis everywhere.
    grid_flat = build_grid(resolution).reshape(HW, 4).astype(jnp.float32)
    gT = grid_flat.T                                        # [4, HW]
    wT = jnp.asarray(weight, jnp.float32).T                 # [C, 4]
    b2 = jnp.asarray(bias, jnp.float32).reshape(C, 1)       # [C, 1]

    # Free reshape (no transpose): stay in NCHW, flatten the spatial dims.
    x3 = inputs_nchw.reshape(B, C, HW)                      # [B, C, HW]

    # Pad the lane axis to a multiple of 128 so blocks stay bounded and stores
    # stay unmasked even for odd spatial extents.
    HW_pad = _round_up(HW, 128)
    if HW_pad != HW:
        x3 = jnp.pad(x3, ((0, 0), (0, 0), (0, HW_pad - HW)))
        gT = jnp.pad(gT, ((0, 0), (0, HW_pad - HW)))

    x_itemsize = inputs_nchw.dtype.itemsize
    hw_tile = _pick_hw_tile(HW_pad, C, x_itemsize, target_block_bytes)
    n_hw = HW_pad // hw_tile
    Bt = _pick_batch_tile(B, C * hw_tile * x_itemsize, target_block_bytes)
    n_b = B // Bt

    emb_dtype = _emb_dtype(inputs_nchw.dtype)
    vmem_limit = _vmem_limit_bytes(Bt, C, hw_tile, x_itemsize,
                                   jnp.dtype(emb_dtype).itemsize)

    out = pl.pallas_call(
        _soft_pos_embed_kernel,
        out_shape=jax.ShapeDtypeStruct((B, C, HW_pad), inputs_nchw.dtype),
        grid_spec=pltpu.PrefetchScalarGridSpec(
            num_scalar_prefetch=0,
            grid=(n_hw, n_b),                                # batch innermost
            in_specs=[
                pl.BlockSpec((4, hw_tile), lambda j, b: (0, j)),       # grid^T (per tile)
                pl.BlockSpec((C, 4), lambda j, b: (0, 0)),             # weight^T (shared)
                pl.BlockSpec((C, 1), lambda j, b: (0, 0)),             # bias (shared)
                pl.BlockSpec((Bt, C, hw_tile), lambda j, b: (b, 0, j)),  # x
            ],
            out_specs=pl.BlockSpec((Bt, C, hw_tile), lambda j, b: (b, 0, j)),
            scratch_shapes=[pltpu.VMEM((C, hw_tile), emb_dtype)],  # emb, reused over B
        ),
        # TODO(synk): on v7x, profile and switch axis 0 to pltpu.CORE_PARALLEL if
        # plain "parallel" does not shard HW tiles across both TensorCores.
        compiler_params=pltpu.CompilerParams(
            dimension_semantics=("parallel", "arbitrary"),
            vmem_limit_bytes=vmem_limit,
        ),
        input_output_aliases=({3: 0} if donate_input else {}),
    )(gT, wT, b2, x3)

    if HW_pad != HW:
        out = out[:, :, :HW]
    return out.reshape(B, C, H, W)


if __name__ == "__main__":
    B, hidden, H, W = 2, 32, 16, 16

    key = jax.random.PRNGKey(0)
    k_x, k_w, k_b = jax.random.split(key, 3)

    # Deterministic Linear(4, hidden) init (PyTorch-style uniform +/- 1/sqrt(fan_in)).
    bound = 1.0 / jnp.sqrt(4.0)
    weight = jax.random.uniform(k_w, (4, hidden), jnp.float32, -bound, bound)  # [in, out]
    bias = jax.random.uniform(k_b, (hidden,), jnp.float32, -bound, bound)

    x = jax.random.normal(k_x, (B, hidden, H, W), jnp.float32)  # NCHW, C == hidden

    out = soft_position_embed(x, weight, bias, (H, W))
    out = jax.block_until_ready(out)

    # Plain-JAX reference check.
    emb_ref = build_grid((H, W)) @ weight + bias                 # [H, W, hidden]
    ref = x + jnp.transpose(emb_ref, (2, 0, 1))[None]            # [B, hidden, H, W]
    assert out.shape == x.shape
    assert jnp.allclose(out, ref, atol=1e-5, rtol=1e-5)

    print("KERNEL_OK")
</pallas_src>

<mosaic_0001>
module attributes {stable_mosaic.version = 11 : i64} {
  func.func @_soft_pos_embed_kernel(%arg0: i32, %arg1: i32, %arg2: memref<4x256xf32, #tpu.memory_space<vmem>>, %arg3: memref<32x4xf32, #tpu.memory_space<vmem>>, %arg4: memref<32x1xf32, #tpu.memory_space<vmem>>, %arg5: memref<2x32x256xf32, #tpu.memory_space<vmem>>, %arg6: memref<2x32x256xf32, #tpu.memory_space<vmem>>, %arg7: memref<32x256xf32, #tpu.memory_space<vmem>>) attributes {dimension_semantics = [#tpu.dimension_semantics<parallel>, #tpu.dimension_semantics<arbitrary>], iteration_bounds = array<i64: 1, 1>, scalar_prefetch = 0 : i64, scratch_operands = 1 : i64, tpu.core_type = #tpu.core_type<tc>, window_params = [{transform_indices = @transform_0, window_bounds = array<i64: 4, 256>}, {pipeline_mode = #tpu.pipeline_mode<synchronous>, transform_indices = @transform_1, window_bounds = array<i64: 32, 4>}, {pipeline_mode = #tpu.pipeline_mode<synchronous>, transform_indices = @transform_2, window_bounds = array<i64: 32, 1>}, {transform_indices = @transform_3, window_bounds = array<i64: 2, 32, 256>}, {transform_indices = @transform_4, window_bounds = array<i64: 2, 32, 256>}]} {
    %c0_i32 = arith.constant 0 : i32
    %0 = arith.cmpi eq, %arg1, %c0_i32 : i32
    %1 = arith.extui %0 : i1 to i32
    %c0_i32_0 = arith.constant 0 : i32
    %2 = arith.cmpi ne, %1, %c0_i32_0 : i32
    scf.if %2 {
      %c0_8 = arith.constant 0 : index
      %c0_9 = arith.constant 0 : index
      %9 = vector.load %arg2[%c0_8, %c0_9] : memref<4x256xf32, #tpu.memory_space<vmem>>, vector<4x256xf32>
      %c0_10 = arith.constant 0 : index
      %c0_11 = arith.constant 0 : index
      %10 = vector.load %arg3[%c0_10, %c0_11] : memref<32x4xf32, #tpu.memory_space<vmem>>, vector<32x4xf32>
      %c0_12 = arith.constant 0 : index
      %c0_13 = arith.constant 0 : index
      %11 = vector.load %arg4[%c0_12, %c0_13] : memref<32x1xf32, #tpu.memory_space<vmem>>, vector<32x1xf32>
      %12 = vector.extract_strided_slice %10 {offsets = [0, 0], sizes = [32, 1], strides = [1, 1]} : vector<32x4xf32> to vector<32x1xf32>
      %13 = vector.extract_strided_slice %9 {offsets = [0, 0], sizes = [1, 256], strides = [1, 1]} : vector<4x256xf32> to vector<1x256xf32>
      %14 = vector.broadcast %12 : vector<32x1xf32> to vector<32x256xf32>
      %15 = vector.broadcast %13 : vector<1x256xf32> to vector<32x256xf32>
      %16 = arith.mulf %14, %15 : vector<32x256xf32>
      %17 = vector.broadcast %11 : vector<32x1xf32> to vector<32x256xf32>
      %18 = arith.addf %17, %16 : vector<32x256xf32>
      %19 = vector.extract_strided_slice %10 {offsets = [0, 1], sizes = [32, 1], strides = [1, 1]} : vector<32x4xf32> to vector<32x1xf32>
      %20 = vector.extract_strided_slice %9 {offsets = [1, 0], sizes = [1, 256], strides = [1, 1]} : vector<4x256xf32> to vector<1x256xf32>
      %21 = vector.broadcast %19 : vector<32x1xf32> to vector<32x256xf32>
      %22 = vector.broadcast %20 : vector<1x256xf32> to vector<32x256xf32>
      %23 = arith.mulf %21, %22 : vector<32x256xf32>
      %24 = arith.addf %18, %23 : vector<32x256xf32>
      %25 = vector.extract_strided_slice %10 {offsets = [0, 2], sizes = [32, 1], strides = [1, 1]} : vector<32x4xf32> to vector<32x1xf32>
      %26 = vector.extract_strided_slice %9 {offsets = [2, 0], sizes = [1, 256], strides = [1, 1]} : vector<4x256xf32> to vector<1x256xf32>
      %27 = vector.broadcast %25 : vector<32x1xf32> to vector<32x256xf32>
      %28 = vector.broadcast %26 : vector<1x256xf32> to vector<32x256xf32>
      %29 = arith.mulf %27, %28 : vector<32x256xf32>
      %30 = arith.addf %24, %29 : vector<32x256xf32>
      %31 = vector.extract_strided_slice %10 {offsets = [0, 3], sizes = [32, 1], strides = [1, 1]} : vector<32x4xf32> to vector<32x1xf32>
      %32 = vector.extract_strided_slice %9 {offsets = [3, 0], sizes = [1, 256], strides = [1, 1]} : vector<4x256xf32> to vector<1x256xf32>
      %33 = vector.broadcast %31 : vector<32x1xf32> to vector<32x256xf32>
      %34 = vector.broadcast %32 : vector<1x256xf32> to vector<32x256xf32>
      %35 = arith.mulf %33, %34 : vector<32x256xf32>
      %36 = arith.addf %30, %35 : vector<32x256xf32>
      %c0_14 = arith.constant 0 : index
      %c0_15 = arith.constant 0 : index
      %37 = vector.load %arg7[%c0_14, %c0_15] : memref<32x256xf32, #tpu.memory_space<vmem>>, vector<32x256xf32>
      tpu.vector_store %arg7[%c0_14, %c0_15], %36 {strides = array<i32>} : memref<32x256xf32, #tpu.memory_space<vmem>>, vector<32x256xf32>,
    } else {
    }
    %c0 = arith.constant 0 : index
    %c0_1 = arith.constant 0 : index
    %c0_2 = arith.constant 0 : index
    %3 = vector.load %arg5[%c0, %c0_1, %c0_2] : memref<2x32x256xf32, #tpu.memory_space<vmem>>, vector<2x32x256xf32>
    %c0_3 = arith.constant 0 : index
    %c0_4 = arith.constant 0 : index
    %4 = vector.load %arg7[%c0_3, %c0_4] : memref<32x256xf32, #tpu.memory_space<vmem>>, vector<32x256xf32>
    %5 = vector.shape_cast %4 : vector<32x256xf32> to vector<1x32x256xf32>
    %6 = vector.broadcast %5 : vector<1x32x256xf32> to vector<2x32x256xf32>
    %7 = arith.addf %3, %6 : vector<2x32x256xf32>
    %c0_5 = arith.constant 0 : index
    %c0_6 = arith.constant 0 : index
    %c0_7 = arith.constant 0 : index
    %8 = vector.load %arg6[%c0_5, %c0_6, %c0_7] : memref<2x32x256xf32, #tpu.memory_space<vmem>>, vector<2x32x256xf32>
    tpu.vector_store %arg6[%c0_5, %c0_6, %c0_7], %7 {strides = array<i32>} : memref<2x32x256xf32, #tpu.memory_space<vmem>>, vector<2x32x256xf32>,
    return
  }
  func.func @transform_0(%arg0: i32, %arg1: i32) -> (i32, i32) {
    %c0_i32 = arith.constant 0 : i32
    %c0_i32_0 = arith.constant 0 : i32
    return %c0_i32, %arg0 : i32, i32
  }
  func.func @transform_1(%arg0: i32, %arg1: i32) -> (i32, i32) {
    %c0_i32 = arith.constant 0 : i32
    %c0_i32_0 = arith.constant 0 : i32
    %c0_i32_1 = arith.constant 0 : i32
    return %c0_i32, %c0_i32_0 : i32, i32
  }
  func.func @transform_2(%arg0: i32, %arg1: i32) -> (i32, i32) {
    %c0_i32 = arith.constant 0 : i32
    %c0_i32_0 = arith.constant 0 : i32
    %c0_i32_1 = arith.constant 0 : i32
    return %c0_i32, %c0_i32_0 : i32, i32
  }
  func.func @transform_3(%arg0: i32, %arg1: i32) -> (i32, i32, i32) {
    %c0_i32 = arith.constant 0 : i32
    %c0_i32_0 = arith.constant 0 : i32
    return %arg1, %c0_i32, %arg0 : i32, i32, i32
  }
  func.func @transform_4(%arg0: i32, %arg1: i32) -> (i32, i32, i32) {
    %c0_i32 = arith.constant 0 : i32
    %c0_i32_0 = arith.constant 0 : i32
    return %arg1, %c0_i32, %arg0 : i32, i32, i32
  }
}

</mosaic_0001>

<bundles_post_ra>
// kernel: tpu_custom_call.1
= control target key start
LH: loop header
LB: loop body
LE: loop exit
PB: predicated region body
PF: predicated region fallthrough
CT: control target
= control target key end

     0   :  { %9 = vsyncpa [#allocation4], 0  ;;  %s553_s0 = inlined_call_operand.vmem [shape: f32[4,256], index: 0, kind: input, shape index: {}]   ;;  %s554_s1 = inlined_call_operand.vmem [shape: f32[32,4], index: 1, kind: input, shape index: {}]   ;;  %s555_s2 = inlined_call_operand.vmem [shape: f32[32,1], index: 2, kind: input, shape index: {}]   ;;  %s556_s3 = inlined_call_operand.hbm [shape: f32[2,32,256], index: 3, kind: input, shape index: {}]   ;;  %s557_s4 = inlined_call_operand.hbm [shape: f32[2,32,256], index: 4, kind: output, shape index: {}]  }
   0x1   :  { %10 = vsyncpa [#allocation5], 0  ;;  %s415_s15 = smov [#allocation3]   ;;  %s367_s19 = scalar_lea.hbm %s556_s3, 2048 }
   0x2   :  { %s22_s16 = sshll.u32 %s415_s15, 4  ;;  %p368_p0 = scmp.ne.s32.totalorder %s556_s3, %s367_s19  ;;  %s23_s16 = int_to_ptr.vmem [resolvable:$true] %s22_s16 }
   0x3   :  { %p371_p1 = scmp.lt.u32.totalorder %s367_s19, %s556_s3 }
   0x5   :  { %p373_p2 = pnand %p371_p1, %p368_p0 }
   0x7   :  { %376 = shalt.err (!%p373_p2)
}
   0x8   :  { %s377_s24 = scalar_lea.vmem %s23_s16, 2048  ;;  %p382_p4 = scmp.lt.s32.totalorder %s23_s16, %s23_s16 }
   0x9   :  { %p378_p3 = scmp.ne.s32.totalorder %s23_s16, %s377_s24  ;;  %p383_p5 = scmp.lt.s32.totalorder %s377_s24, %s377_s24 }
   0xb   :  { %p384_p6 = por %p383_p5, %p382_p4 }
   0xd   :  { %p385_p7 = pnand %p384_p6, %p378_p3 }
   0xf   :  { %388 = shalt.err (!%p385_p7)
}
  0x10   :  { %s416_s25 = smov 256   ;;  %s417_s26 = smov 16  }
  0x11   :  { %28 = dma.hbm_to_vmem [thread:$0]  %s556_s3, 2048, %s23_s16, [#allocation4], %s416_s25, %s416_s25, %s417_s26  }
  0x12   :  { %411 = dma.done.wait [#allocation4], 2048  }
  0x13   :  { %412 = vsyncadd [#allocation4], 4294965248  ;;  %v418_v0 = vmov 0   ;;  %v39_v1 = vld [vmem:[%s554_s1 + $0x10] sm:$0xff]  ;;  %v37_v2 = vld [vmem:[%s554_s1] sm:$0xff]  ;;  %v419_v9 = vmov 1   ;;  %v66_v16 = vlaneseq }
  0x14   :  { %360 = vset.pattern.permute.xlu1 %v418_v0  ;;  %359 = vset.pattern.permute.xlu0 %v418_v0  ;;  %v40_v3 = vld [vmem:[%s554_s1 + $0x18] sm:$0xff]  ;;  %v38_v4 = vld [vmem:[%s554_s1 + $0x8] sm:$0xff]  ;;  %v41_v6 = vld [vmem:[%s555_s2] sm:$0xff]  ;;  %v420_v10 = vmov 2   ;;  %v421_v11 = vmov 3  }
  0x15   :  { %57 = vperm.xlu1 %360, %v39_v1   ;;  %47 = vperm.xlu0 %359, %v37_v2   ;;  %v42_v5 = vld [vmem:[%s555_s2 + $0x8] sm:$0xff]  ;;  %v44_v7 = vld [vmem:[%s555_s2 + $0x18] sm:$0xff]  ;;  %v43_v8 = vld [vmem:[%s555_s2 + $0x10] sm:$0xff]  ;;  %v67_v19 = vshrl.u32 %v66_v16, 7 }
  0x16   :  { %v36_v26 = vld [vmem:[%s553_s0] sm:$0xff]  ;;  %s422_s0 = smov [#allocation6]  }
  0x17   :  { %v68_v22 = vsub.s32 0, %v67_v19  ;;  %v72_v23 = vsub.s32 4, %v67_v19  ;;  %v138_v24 = vsub.s32 1, %v67_v19  ;;  %v142_v25 = vsub.s32 5, %v67_v19  ;;  %s339_s18 = sshll.u32 %s422_s0, 4  ;;  %s340_s18 = int_to_ptr.vmem [resolvable:$true] %s339_s18 }
  0x18   :  { %v188_v27 = vsub.s32 2, %v67_v19  ;;  %v192_v28 = vsub.s32 6, %v67_v19  ;;  %v238_v35 = vsub.s32 3, %v67_v19  ;;  %v242_v36 = vsub.s32 7, %v67_v19  ;;  %s389_s19 = scalar_lea.vmem %s340_s18, 2048  ;;  %p394_p9 = scmp.lt.s32.totalorder %s340_s18, %s340_s18 }
  0x19   :  { %62 = vperm.xlu1 %360, %v40_v3   ;;  %52 = vperm.xlu0 %359, %v38_v4   ;;  %v69_v31 = vrot.slane %v36_v26, %v68_v22  ;;  %v73_v32 = vrot.slane %v36_v26, %v72_v23  ;;  %v139_v33 = vrot.slane %v36_v26, %v138_v24  ;;  %p390_p8 = scmp.ne.s32.totalorder %s340_s18, %s389_s19  ;;  %p395_p10 = scmp.lt.s32.totalorder %s389_s19, %s389_s19 }
  0x1a   :  { %v143_v34 = vrot.slane %v36_v26, %v142_v25  ;;  %v189_v37 = vrot.slane %v36_v26, %v188_v27  ;;  %v193_v38 = vrot.slane %v36_v26, %v192_v28  ;;  %v239_v45 = vrot.slane %v36_v26, %v238_v35  ;;  %v287_v28 = vld [vmem:[#allocation3 + $0x48] sm:$0xff] }
  0x1b   :  { %v79_v41 = vrot.slane %v69_v31, %v68_v22  ;;  %v83_v42 = vrot.slane %v73_v32, %v68_v22  ;;  %v496_v43 = vrot.slane %v139_v33, %v138_v24  ;;  %v243_v46 = vrot.slane %v36_v26, %v242_v36  ;;  %v279_v26 = vld [vmem:[#allocation3 + $0x8] sm:$0xff]  ;;  %p396_p11 = por %p395_p10, %p394_p9 }
  0x1c   :  { %v498_v44 = vrot.slane %v143_v34, %v138_v24  ;;  %v500_v49 = vrot.slane %v189_v37, %v188_v27  ;;  %v502_v50 = vrot.slane %v193_v38, %v188_v27  ;;  %v506_v57 = vrot.slane %v239_v45, %v238_v35  ;;  %v286_v27 = vld [vmem:[#allocation3 + $0x40] sm:$0xff]  ;;  %v284_v45 = vld [vmem:[#allocation3 + $0x30] sm:$0xff] }
  0x1d   :  { %99 = vperm.xlu1 %360, %v42_v5   ;;  %94 = vperm.xlu0 %359, %v41_v6   ;;  %v508_v58 = vrot.slane %v243_v46, %v238_v35  ;;  %p397_p12 = pnand %p396_p11, %p390_p8 }
  0x21   :  { %109 = vperm.xlu1 %360, %v44_v7   ;;  %104 = vperm.xlu0 %359, %v43_v8  }
  0x25   :  { %362 = vset.pattern.permute.xlu1 %v419_v9  ;;  %361 = vset.pattern.permute.xlu0 %v419_v9 }
  0x26   :  { %125 = vperm.xlu1 %362, %v38_v4   ;;  %121 = vperm.xlu0 %361, %v37_v2  }
  0x2a   :  { %129 = vperm.xlu1 %362, %v39_v1   ;;  %133 = vperm.xlu0 %361, %v40_v3  }
  0x2e   :  { %363 = vset.pattern.permute.xlu1 %v420_v10  ;;  %364 = vset.pattern.permute.xlu0 %v420_v10 }
  0x2f   :  { %171 = vperm.xlu1 %363, %v37_v2   ;;  %175 = vperm.xlu0 %364, %v38_v4  }
  0x33   :  { %179 = vperm.xlu1 %363, %v39_v1   ;;  %365 = vset.pattern.permute.xlu0 %v421_v11 }
  0x34   :  { %221 = vperm.xlu0 %365, %v37_v2  }
  0x37   :  { %183 = vperm.xlu1 %363, %v40_v3  }
  0x38   :  { %233 = vperm.xlu0 %365, %v40_v3  }
  0x3b   :  { %366 = vset.pattern.permute.xlu1 %v421_v11 }
  0x3c   :  { %225 = vperm.xlu1 %366, %v38_v4  }
  0x40   :  { %229 = vperm.xlu1 %366, %v39_v1  }
  0x94   :  { %v487_v12 = vpop.permute.xlu1 %57  ;;  %v48_v13 = vpop.permute.xlu0 %47 }
  0x95   :  { %v84_v47 = vmul.f32 %v79_v41, %v48_v13  ;;  %v85_v48 = vmul.f32 %v83_v42, %v48_v13  ;;  %v88_v22 = vmul.f32 %v79_v41, %v487_v12  ;;  %v89_v23 = vmul.f32 %v83_v42, %v487_v12 }
  0x98   :  { %v63_v14 = vpop.permute.xlu1 %62  ;;  %v53_v15 = vpop.permute.xlu0 %52 }
  0x99   :  { %v86_v55 = vmul.f32 %v79_v41, %v53_v15  ;;  %v87_v56 = vmul.f32 %v83_v42, %v53_v15  ;;  %v90_v63 = vmul.f32 %v79_v41, %v63_v14  ;;  %v91_v0 = vmul.f32 %v83_v42, %v63_v14 }
  0x9c   :  { %v100_v17 = vpop.permute.xlu1 %99  ;;  %v95_v18 = vpop.permute.xlu0 %94 }
  0x9d   :  { %v112_v59 = vadd.f32 %v95_v18, %v84_v47  ;;  %v113_v60 = vadd.f32 %v95_v18, %v85_v48  ;;  %v114_v8 = vadd.f32 %v100_v17, %v86_v55  ;;  %v115_v9 = vadd.f32 %v100_v17, %v87_v56  ;;  %v278_v18 = vld [vmem:[#allocation3] sm:$0xff]  ;;  %v292_v55 = vld [vmem:[#allocation3 + $0x70] sm:$0xff]  ;;  %v293_v56 = vld [vmem:[#allocation3 + $0x78] sm:$0xff] }
  0xa0   :  { %v110_v20 = vpop.permute.xlu1 %109  ;;  %v489_v21 = vpop.permute.xlu0 %104 }
  0xa1   :  { %v118_v10 = vadd.f32 %v110_v20, %v90_v63  ;;  %v119_v11 = vadd.f32 %v110_v20, %v91_v0  ;;  %v116_v48 = vadd.f32 %v489_v21, %v88_v22 }
  0xa5   :  { %v126_v29 = vpop.permute.xlu1 %125  ;;  %v122_v30 = vpop.permute.xlu0 %121 }
  0xa6   :  { %v154_v51 = vmul.f32 %v496_v43, %v122_v30  ;;  %v155_v52 = vmul.f32 %v498_v44, %v122_v30  ;;  %v156_v1 = vmul.f32 %v496_v43, %v126_v29  ;;  %v157_v2 = vmul.f32 %v498_v44, %v126_v29 }
  0xa8   :  { %v162_v3 = vadd.f32 %v154_v51, %v112_v59  ;;  %v163_v4 = vadd.f32 %v155_v52, %v113_v60  ;;  %v164_v24 = vadd.f32 %v156_v1, %v114_v8  ;;  %v165_v25 = vadd.f32 %v157_v2, %v115_v9  ;;  %v289_v8 = vld [vmem:[#allocation3 + $0x58] sm:$0xff] }
  0xa9   :  { %v494_v39 = vpop.permute.xlu1 %129  ;;  %v134_v40 = vpop.permute.xlu0 %133  ;;  %v117_v51 = vadd.f32 %v489_v21, %v89_v23 }
  0xaa   :  { %v160_v5 = vmul.f32 %v496_v43, %v134_v40  ;;  %v161_v6 = vmul.f32 %v498_v44, %v134_v40  ;;  %v158_v52 = vmul.f32 %v496_v43, %v494_v39  ;;  %v280_v43 = vld [vmem:[#allocation3 + $0x10] sm:$0xff] }
  0xac   :  { %v168_v17 = vadd.f32 %v160_v5, %v118_v10  ;;  %v169_v29 = vadd.f32 %v161_v6, %v119_v11  ;;  %v281_v5 = vld [vmem:[#allocation3 + $0x18] sm:$0xff]  ;;  %v288_v6 = vld [vmem:[#allocation3 + $0x50] sm:$0xff]  ;;  %v166_v11 = vadd.f32 %v158_v52, %v116_v48 }
  0xae   :  { %v172_v53 = vpop.permute.xlu1 %171  ;;  %v176_v54 = vpop.permute.xlu0 %175 }
  0xaf   :  { %v204_v61 = vmul.f32 %v500_v49, %v172_v53  ;;  %v205_v62 = vmul.f32 %v502_v50, %v172_v53  ;;  %v206_v32 = vmul.f32 %v500_v49, %v176_v54  ;;  %v207_v33 = vmul.f32 %v502_v50, %v176_v54  ;;  %v285_v54 = vld [vmem:[#allocation3 + $0x38] sm:$0xff] }
  0xb0   :  { %v159_v53 = vmul.f32 %v498_v44, %v494_v39 }
  0xb1   :  { %v212_v15 = vadd.f32 %v204_v61, %v162_v3  ;;  %v213_v16 = vadd.f32 %v205_v62, %v163_v4  ;;  %v214_v59 = vadd.f32 %v206_v32, %v164_v24  ;;  %v215_v60 = vadd.f32 %v207_v33, %v165_v25  ;;  %v283_v24 = vld [vmem:[#allocation3 + $0x28] sm:$0xff]  ;;  %v290_v25 = vld [vmem:[#allocation3 + $0x60] sm:$0xff] }
  0xb2   :  { %v180_v7 = vpop.permute.xlu1 %179 }
  0xb3   :  { %v222_v13 = vpop.permute.xlu0 %221  ;;  %v208_v21 = vmul.f32 %v500_v49, %v180_v7  ;;  %v209_v0 = vmul.f32 %v502_v50, %v180_v7 }
  0xb4   :  { %v254_v14 = vmul.f32 %v506_v57, %v222_v13  ;;  %v255_v19 = vmul.f32 %v508_v58, %v222_v13  ;;  %v167_v13 = vadd.f32 %v159_v53, %v117_v51 }
  0xb6   :  { %v262_v20 = vadd.f32 %v254_v14, %v212_v15  ;;  %v263_v30 = vadd.f32 %v255_v19, %v213_v16  ;;  %v184_v31 = vpop.permute.xlu1 %183  ;;  %v217_v14 = vadd.f32 %v209_v0, %v167_v13  ;;  %v282_v19 = vld [vmem:[#allocation3 + $0x20] sm:$0xff] }
  0xb7   :  { %v210_v34 = vmul.f32 %v500_v49, %v184_v31  ;;  %v211_v35 = vmul.f32 %v502_v50, %v184_v31  ;;  %v234_v36 = vpop.permute.xlu0 %233 }
  0xb8   :  { %v302_v12 = vadd.f32 %v278_v18, %v262_v20  ;;  %v303_v37 = vadd.f32 %v279_v26, %v263_v30  ;;  %v310_v38 = vadd.f32 %v286_v27, %v262_v20  ;;  %v311_v40 = vadd.f32 %v287_v28, %v263_v30  ;;  %v291_v26 = vld [vmem:[#allocation3 + $0x68] sm:$0xff] }
  0xb9   :  { %v218_v41 = vadd.f32 %v210_v34, %v168_v17  ;;  %v219_v42 = vadd.f32 %v211_v35, %v169_v29  ;;  %v260_v46 = vmul.f32 %v506_v57, %v234_v36  ;;  %v261_v47 = vmul.f32 %v508_v58, %v234_v36 }
  0xba   :  { %318 = vst [vmem:[#allocation6] sm:$0xff] %v302_v12  ;;  %319 = vst [vmem:[#allocation6 + $0x8] sm:$0xff] %v303_v37  ;;  %v216_v18 = vadd.f32 %v208_v21, %v166_v11 }
  0xbb   :  { %326 = vst [vmem:[#allocation6 + $0x40] sm:$0xff] %v310_v38  ;;  %327 = vst [vmem:[#allocation6 + $0x48] sm:$0xff] %v311_v40  ;;  %v268_v61 = vadd.f32 %v260_v46, %v218_v41  ;;  %v269_v62 = vadd.f32 %v261_v47, %v219_v42  ;;  %v226_v63 = vpop.permute.xlu1 %225 }
  0xbc   :  { %v256_v1 = vmul.f32 %v506_v57, %v226_v63  ;;  %v257_v39 = vmul.f32 %v508_v58, %v226_v63 }
  0xbd   :  { %v308_v44 = vadd.f32 %v284_v45, %v268_v61  ;;  %v309_v2 = vadd.f32 %v285_v54, %v269_v62  ;;  %v316_v3 = vadd.f32 %v292_v55, %v268_v61  ;;  %v317_v4 = vadd.f32 %v293_v56, %v269_v62 }
  0xbe   :  { %v264_v9 = vadd.f32 %v256_v1, %v214_v59  ;;  %v265_v10 = vadd.f32 %v257_v39, %v215_v60 }
  0xbf   :  { %324 = vst [vmem:[#allocation6 + $0x30] sm:$0xff] %v308_v44  ;;  %325 = vst [vmem:[#allocation6 + $0x38] sm:$0xff] %v309_v2  ;;  %v230_v49 = vpop.permute.xlu1 %229 }
  0xc0   :  { %332 = vst [vmem:[#allocation6 + $0x70] sm:$0xff] %v316_v3  ;;  %333 = vst [vmem:[#allocation6 + $0x78] sm:$0xff] %v317_v4  ;;  %v304_v50 = vadd.f32 %v280_v43, %v264_v9  ;;  %v305_v7 = vadd.f32 %v281_v5, %v265_v10  ;;  %v312_v15 = vadd.f32 %v288_v6, %v264_v9 }
  0xc1   :  { %v313_v16 = vadd.f32 %v289_v8, %v265_v10  ;;  %v258_v22 = vmul.f32 %v506_v57, %v230_v49  ;;  %v259_v23 = vmul.f32 %v508_v58, %v230_v49 }
  0xc2   :  { %320 = vst [vmem:[#allocation6 + $0x10] sm:$0xff] %v304_v50  ;;  %321 = vst [vmem:[#allocation6 + $0x18] sm:$0xff] %v305_v7 }
  0xc3   :  { %328 = vst [vmem:[#allocation6 + $0x50] sm:$0xff] %v312_v15  ;;  %329 = vst [vmem:[#allocation6 + $0x58] sm:$0xff] %v313_v16  ;;  %v266_v27 = vadd.f32 %v258_v22, %v216_v18  ;;  %v267_v28 = vadd.f32 %v259_v23, %v217_v14 }
  0xc5   :  { %v306_v17 = vadd.f32 %v282_v19, %v266_v27  ;;  %v307_v29 = vadd.f32 %v283_v24, %v267_v28  ;;  %v314_v20 = vadd.f32 %v290_v25, %v266_v27  ;;  %v315_v30 = vadd.f32 %v291_v26, %v267_v28 }
  0xc7   :  { %322 = vst [vmem:[#allocation6 + $0x20] sm:$0xff] %v306_v17  ;;  %323 = vst [vmem:[#allocation6 + $0x28] sm:$0xff] %v307_v29 }
  0xc8   :  { %330 = vst [vmem:[#allocation6 + $0x60] sm:$0xff] %v314_v20  ;;  %331 = vst [vmem:[#allocation6 + $0x68] sm:$0xff] %v315_v30 }
  0xc9   :  { %400 = shalt.err (!%p397_p12)
}
  0xca   :  { %s401_s22 = scalar_lea.hbm %s557_s4, 2048 }
  0xcb   :  { %p402_p13 = scmp.ne.s32.totalorder %s557_s4, %s401_s22  ;;  %p405_p0 = scmp.lt.u32.totalorder %s401_s22, %s557_s4 }
  0xcd   :  { %p407_p1 = pnand %p405_p0, %p402_p13 }
  0xcf   :  { %410 = shalt.err (!%p407_p1)
}
  0xd0   :  { %345 = dma.vmem_to_hbm [thread:$0]  %s340_s18, 2048, %s557_s4, [#allocation5], %s416_s25, %s416_s25, %s417_s26  }
  0xd1   :  { %413 = dma.done.wait [#allocation5], 2048  }
  0xd2   :  { %414 = vsyncadd [#allocation5], 4294965248 }
  0xd3   :  { %349 = vsyncpa [#allocation4], 1 }
  0xd4   :  { %350 = vsyncpa [#allocation5], 1 }

</bundles_post_ra>
